<compile_context>
chip_gen: v5e
topology: v5e:2x2
jax: 0.10.0
libtpu: 0.0.40
codegen_flags: <defaults>
</compile_context>

<pallas_src>
import math
from functools import partial

import jax
import jax.numpy as jnp
from jax import lax
from jax.experimental import pallas as pl
from jax.experimental.pallas import tpu as pltpu

LANE = 128


def _encoder_layer_kernel(head_dim,
                          x_ref, wqkv_ref, wfc_ref, wc1_ref, wc2_ref,
                          seg_head_ref, seg_start_ref, seg_ln_mean_ref,
                          seg_ln_var_ref, bias_ref, bc1_ref, o_ref):
    f32, bf16 = jnp.float32, jnp.bfloat16
    lanes = x_ref.shape[-1]                      # 128

    x = x_ref[...]                               # (tm, 128) f32, lane-packed rows
    xb = x.astype(bf16)                          # bf16 only for MXU operands

    seg_head = seg_head_ref[...]                 # (128,128) bf16: ones within head segments
    seg_start = seg_start_ref[...]               # (128,128) bf16: picks head-segment start lane
    seg_ln_mean = seg_ln_mean_ref[...]           # (256,128) bf16: [seg; seg] * (1/d_model)
    seg_ln_var = seg_ln_var_ref[...]             # (128,128) bf16: seg * (1/d_model)

    biases = bias_ref[...]                       # (8,128) f32 slab
    bfc, g1, b1 = biases[0:1, :], biases[1:2, :], biases[2:3, :]
    bc2, g2, b2 = biases[3:4, :], biases[4:5, :], biases[5:6, :]
    bc1 = bc1_ref[...][0:1, :]                   # (1, lane_pack*pf_dim) f32

    def ln_mean(vals):
        # Exact (~f32) segmented mean: hi/lo bf16 split fused into one K=256 MXU
        # matmul; 1/d_model is baked into the segment matrix (exact power-of-two).
        hi = vals.astype(bf16)
        lo = (vals - hi.astype(f32)).astype(bf16)
        return jnp.dot(jnp.concatenate([hi, lo], axis=1), seg_ln_mean,
                       preferred_element_type=f32)

    def ln_var(centered):
        # Sum of non-negative values over <=32 lanes: single bf16 pass is plenty.
        return jnp.dot((centered * centered).astype(bf16), seg_ln_var,
                       preferred_element_type=f32)

    # ---- MultiHeadAttentionLayer (elementwise scores, softmax over head_dim) ----
    qkv = jnp.dot(xb, wqkv_ref[...], preferred_element_type=f32)   # (tm, 384)
    q = qkv[:, :lanes]                        # 1/sqrt(d_model) already folded into Wq
    k = qkv[:, lanes:2 * lanes]
    v = qkv[:, 2 * lanes:]
    s = q * k

    # Per-head max: log2(head_dim) XLU roll max-tree puts each segment's max on its
    # start lane; one MXU matmul against seg_start broadcasts it to the whole segment.
    w = s
    shift = 1
    while shift < head_dim:
        w = jnp.maximum(w, pltpu.roll(w, lanes - shift, axis=1))
        shift *= 2
    m_seg = jnp.dot(w.astype(bf16), seg_start, preferred_element_type=f32)

    e = jnp.exp(s - m_seg)                                          # single EUP pass
    denom = jnp.dot(e.astype(bf16), seg_head, preferred_element_type=f32)
    a = (v * e) * pl.reciprocal(denom, approx=True)

    attn = jnp.dot(a.astype(bf16), wfc_ref[...], preferred_element_type=f32) + bfc

    # ---- residual + LayerNorm1 (dropout = identity) ----
    r = x + attn
    c = r - ln_mean(r)
    x1 = c * lax.rsqrt(ln_var(c) + 1e-5) * g1 + b1

    # ---- 1x1-conv feed-forward: conv1 -> relu -> conv2 (pointwise linears) ----
    h = jnp.maximum(
        jnp.dot(x1.astype(bf16), wc1_ref[...], preferred_element_type=f32) + bc1, 0.0)
    y = jnp.dot(h.astype(bf16), wc2_ref[...], preferred_element_type=f32) + bc2

    # ---- residual + LayerNorm2 ----
    z = x1 + y
    c2 = z - ln_mean(z)
    o_ref[...] = (c2 * lax.rsqrt(ln_var(c2) + 1e-5) * g2 + b2).astype(o_ref.dtype)


def _round_up(n, m):
    return -(-n // m) * m


def _min_parallel_steps():
    # v7x has two TensorCores per chip: keep >= 2 grid steps per core so each core's
    # BlockSpec pipeline can overlap.  Single-TC parts (v5e/v6e): one big tile is best.
    try:
        kind = jax.devices()[0].device_kind.lower()
    except Exception:
        return 1
    return 4 if "v7" in kind else 1


def _choose_tile(mp8, max_block_rows, min_steps):
    """Pick a packed-row tile (multiple of 8).  Packed rows are zero-padded up to a
    multiple of the tile instead of searching for exact divisors."""
    cap = max(8, (max_block_rows // 8) * 8)
    if min_steps <= 1:
        target = min(cap, mp8)
    else:
        target = min(cap, max(8, (mp8 // min_steps // 8) * 8))
    steps = -(-mp8 // target)
    tm = min(cap, _round_up(-(-mp8 // steps), 8))
    mp_pad = _round_up(mp8, tm)
    return tm, mp_pad


def encoder_layer_pallas(src, params, n_heads, *, max_block_rows=512,
                         out_dtype=jnp.float32):
    S, NB, D = src.shape
    if D % n_heads:
        raise ValueError("d_model must be divisible by n_heads")
    head_dim = D // n_heads
    if head_dim & (head_dim - 1):
        raise ValueError("head_dim must be a power of two")
    if LANE % D:
        # TODO(synk): general d_model (not dividing 128) needs a different packing.
        raise ValueError("d_model must divide 128 for lane packing")
    lane_pack = LANE // D
    pf_dim = params["wc1_t"].shape[1]

    # ---- flatten + pack lane_pack original rows per 128-lane packed row ----
    M = S * NB
    mp8 = _round_up(_round_up(M, lane_pack) // lane_pack, 8)
    tm, Mp = _choose_tile(mp8, max_block_rows, _min_parallel_steps())
    rows_pad = Mp * lane_pack

    x = src.reshape(M, D).astype(jnp.float32)
    if rows_pad != M:
        x = jnp.concatenate([x, jnp.zeros((rows_pad - M, D), jnp.float32)], axis=0)
    xp = x.reshape(Mp, LANE)                     # lane-dense packed f32 input

    # ---- block-diagonal bf16 weights; QKV fused into one (128, 384) matmul ----
    eye = jnp.eye(lane_pack, dtype=jnp.float32)
    bd = lambda w: jnp.kron(eye, w).astype(jnp.bfloat16)
    inv_sqrt_d = 1.0 / math.sqrt(D)              # score scale folded into Wq
    wqkv = jnp.concatenate(
        [bd(params["wq"] * inv_sqrt_d), bd(params["wk"]), bd(params["wv"])], axis=1)
    wfc = bd(params["wfc_t"])
    wc1, wc2 = bd(params["wc1_t"]), bd(params["wc2_t"])

    # segment matrices for in-kernel segmented reductions / broadcasts
    lane_idx = jnp.arange(LANE)
    head_id = lane_idx // head_dim
    seg_head = (head_id[:, None] == head_id[None, :]).astype(jnp.bfloat16)
    seg_start = (lane_idx[:, None] == (head_id * head_dim)[None, :]).astype(jnp.bfloat16)
    row_id = lane_idx // D
    seg_ln = (row_id[:, None] == row_id[None, :]).astype(jnp.float32) * (1.0 / D)
    seg_ln_var = seg_ln.astype(jnp.bfloat16)                       # (128, 128)
    seg_ln_mean = jnp.concatenate([seg_ln, seg_ln], axis=0).astype(jnp.bfloat16)  # (256,128)

    # bias / LN-affine rows, tiled to the packed lane width, stacked into (8,*) slabs
    tile = lambda b: jnp.tile(b.astype(jnp.float32), (1, lane_pack))
    bias_slab = jnp.concatenate(
        [tile(params["bfc"]), tile(params["g1"]), tile(params["b1"]),
         tile(params["bc2"]), tile(params["g2"]), tile(params["b2"]),
         jnp.zeros((2, LANE), jnp.float32)], axis=0)               # (8, 128)
    bc1_slab = jnp.concatenate(
        [tile(params["bc1"]),
         jnp.zeros((7, lane_pack * pf_dim), jnp.float32)], axis=0)  # (8, lane_pack*pf)

    consts = [wqkv, wfc, wc1, wc2, seg_head, seg_start, seg_ln_mean, seg_ln_var,
              bias_slab, bc1_slab]

    kernel = partial(_encoder_layer_kernel, head_dim)
    out_dtype = jnp.dtype(out_dtype)
    alias = {0: 0} if out_dtype == xp.dtype else {}

    out = pl.pallas_call(
        kernel,
        out_shape=jax.ShapeDtypeStruct((Mp, LANE), out_dtype),
        grid=(Mp // tm,),
        in_specs=[pl.BlockSpec((tm, LANE), lambda i: (i, 0))]
                 + [pl.BlockSpec(c.shape, lambda i: (0, 0)) for c in consts],
        out_specs=pl.BlockSpec((tm, LANE), lambda i: (i, 0)),
        input_output_aliases=alias,
        compiler_params=pltpu.CompilerParams(dimension_semantics=("parallel",)),
    )(xp, *consts)

    return out.reshape(rows_pad, D)[:M].reshape(S, NB, D)


def init_params(key, d_model, pf_dim):
    ks = jax.random.split(key, 13)

    def xavier(k, fan_in, fan_out):
        bound = math.sqrt(6.0 / (fan_in + fan_out))
        return jax.random.uniform(k, (fan_in, fan_out), jnp.float32, -bound, bound)

    # Linear/conv weights stored transposed to (in, out) so the kernel computes x @ W.
    return dict(
        wq=xavier(ks[0], d_model, d_model),
        wk=xavier(ks[1], d_model, d_model),
        wv=xavier(ks[2], d_model, d_model),
        wfc_t=xavier(ks[3], d_model, d_model),
        bfc=0.1 * jax.random.normal(ks[4], (1, d_model), jnp.float32),
        g1=1.0 + 0.1 * jax.random.normal(ks[5], (1, d_model), jnp.float32),
        b1=0.1 * jax.random.normal(ks[6], (1, d_model), jnp.float32),
        wc1_t=xavier(ks[7], d_model, pf_dim),
        bc1=0.1 * jax.random.normal(ks[8], (1, pf_dim), jnp.float32),
        wc2_t=xavier(ks[9], pf_dim, d_model),
        bc2=0.1 * jax.random.normal(ks[10], (1, d_model), jnp.float32),
        g2=1.0 + 0.1 * jax.random.normal(ks[11], (1, d_model), jnp.float32),
        b2=0.1 * jax.random.normal(ks[12], (1, d_model), jnp.float32),
    )


def encoder_layer_ref(src, params, n_heads):
    """Pure-JAX f32 reference mirroring the PyTorch forward exactly (eval mode)."""
    S, NB, D = src.shape
    hd = D // n_heads
    q = src @ params["wq"]
    k = src @ params["wk"]
    v = src @ params["wv"]
    qs = q.reshape(S, NB, n_heads, hd)
    ks = k.reshape(S, NB, n_heads, hd)
    vs = v.reshape(S, NB, n_heads, hd)
    p = jax.nn.softmax((qs * ks) / math.sqrt(D), axis=-1)
    a = (vs * p).reshape(S, NB, D)
    attn = a @ params["wfc_t"] + params["bfc"][0]
    r = src + attn

    def ln(t, g, b):
        mu = t.mean(-1, keepdims=True)
        var = ((t - mu) ** 2).mean(-1, keepdims=True)
        return (t - mu) / jnp.sqrt(var + 1e-5) * g[0] + b[0]

    x1 = ln(r, params["g1"], params["b1"])
    h = jnp.maximum(x1 @ params["wc1_t"] + params["bc1"][0], 0.0)
    y = h @ params["wc2_t"] + params["bc2"][0]
    return ln(x1 + y, params["g2"], params["b2"])


if __name__ == "__main__":
    d_model, n_heads, pf_dim = 32, 4, 64
    n_nodes, batch_size, seq = 4, 2, 8

    key = jax.random.PRNGKey(0)
    k_src, k_par = jax.random.split(key)
    src = jax.random.normal(k_src, (seq, n_nodes * batch_size, d_model), jnp.float32)
    params = init_params(k_par, d_model, pf_dim)

    out = encoder_layer_pallas(src, params, n_heads)
    out = jax.block_until_ready(out)

    ref = encoder_layer_ref(src, params, n_heads)
    diff = jnp.abs(out.astype(jnp.float32) - ref)
    max_err = float(jnp.max(diff))
    mean_err = float(jnp.mean(diff))
    # bf16 MXU operands, f32 activation/residual path -> expected max err ~2-4e-2.
    assert max_err < 8e-2 and mean_err < 1.5e-2, f"max={max_err}, mean={mean_err}"
    print("KERNEL_OK")
</pallas_src>

<mosaic_0001>
module attributes {stable_mosaic.version = 11 : i64} {
  func.func @_encoder_layer_kernel(%arg0: i32, %arg1: memref<16x128xf32, #tpu.memory_space<vmem>>, %arg2: memref<128x384xbf16, #tpu.memory_space<vmem>>, %arg3: memref<128x128xbf16, #tpu.memory_space<vmem>>, %arg4: memref<128x256xbf16, #tpu.memory_space<vmem>>, %arg5: memref<256x128xbf16, #tpu.memory_space<vmem>>, %arg6: memref<128x128xbf16, #tpu.memory_space<vmem>>, %arg7: memref<128x128xbf16, #tpu.memory_space<vmem>>, %arg8: memref<256x128xbf16, #tpu.memory_space<vmem>>, %arg9: memref<128x128xbf16, #tpu.memory_space<vmem>>, %arg10: memref<8x128xf32, #tpu.memory_space<vmem>>, %arg11: memref<8x256xf32, #tpu.memory_space<vmem>>, %arg12: memref<16x128xf32, #tpu.memory_space<vmem>>) attributes {dimension_semantics = [#tpu.dimension_semantics<parallel>], iteration_bounds = array<i64: 1>, scalar_prefetch = 0 : i64, scratch_operands = 0 : i64, tpu.core_type = #tpu.core_type<tc>, window_params = [{transform_indices = @transform_0, window_bounds = array<i64: 16, 128>}, {pipeline_mode = #tpu.pipeline_mode<synchronous>, transform_indices = @transform_1, window_bounds = array<i64: 128, 384>}, {pipeline_mode = #tpu.pipeline_mode<synchronous>, transform_indices = @transform_2, window_bounds = array<i64: 128, 128>}, {pipeline_mode = #tpu.pipeline_mode<synchronous>, transform_indices = @transform_3, window_bounds = array<i64: 128, 256>}, {pipeline_mode = #tpu.pipeline_mode<synchronous>, transform_indices = @transform_4, window_bounds = array<i64: 256, 128>}, {pipeline_mode = #tpu.pipeline_mode<synchronous>, transform_indices = @transform_5, window_bounds = array<i64: 128, 128>}, {pipeline_mode = #tpu.pipeline_mode<synchronous>, transform_indices = @transform_6, window_bounds = array<i64: 128, 128>}, {pipeline_mode = #tpu.pipeline_mode<synchronous>, transform_indices = @transform_7, window_bounds = array<i64: 256, 128>}, {pipeline_mode = #tpu.pipeline_mode<synchronous>, transform_indices = @transform_8, window_bounds = array<i64: 128, 128>}, {pipeline_mode = #tpu.pipeline_mode<synchronous>, transform_indices = @transform_9, window_bounds = array<i64: 8, 128>}, {pipeline_mode = #tpu.pipeline_mode<synchronous>, transform_indices = @transform_10, window_bounds = array<i64: 8, 256>}, {transform_indices = @transform_11, window_bounds = array<i64: 16, 128>}]} {
    %c0 = arith.constant 0 : index
    %c0_0 = arith.constant 0 : index
    %0 = vector.load %arg1[%c0, %c0_0] : memref<16x128xf32, #tpu.memory_space<vmem>>, vector<16x128xf32>
    %1 = arith.truncf %0 : vector<16x128xf32> to vector<16x128xbf16>
    %c0_1 = arith.constant 0 : index
    %c0_2 = arith.constant 0 : index
    %2 = vector.load %arg6[%c0_1, %c0_2] : memref<128x128xbf16, #tpu.memory_space<vmem>>, vector<128x128xbf16>
    %c0_3 = arith.constant 0 : index
    %c0_4 = arith.constant 0 : index
    %3 = vector.load %arg7[%c0_3, %c0_4] : memref<128x128xbf16, #tpu.memory_space<vmem>>, vector<128x128xbf16>
    %c0_5 = arith.constant 0 : index
    %c0_6 = arith.constant 0 : index
    %4 = vector.load %arg8[%c0_5, %c0_6] : memref<256x128xbf16, #tpu.memory_space<vmem>>, vector<256x128xbf16>
    %c0_7 = arith.constant 0 : index
    %c0_8 = arith.constant 0 : index
    %5 = vector.load %arg9[%c0_7, %c0_8] : memref<128x128xbf16, #tpu.memory_space<vmem>>, vector<128x128xbf16>
    %c0_9 = arith.constant 0 : index
    %c0_10 = arith.constant 0 : index
    %6 = vector.load %arg10[%c0_9, %c0_10] : memref<8x128xf32, #tpu.memory_space<vmem>>, vector<8x128xf32>
    %7 = vector.extract_strided_slice %6 {offsets = [0, 0], sizes = [1, 128], strides = [1, 1]} : vector<8x128xf32> to vector<1x128xf32>
    %8 = vector.extract_strided_slice %6 {offsets = [1, 0], sizes = [1, 128], strides = [1, 1]} : vector<8x128xf32> to vector<1x128xf32>
    %9 = vector.extract_strided_slice %6 {offsets = [2, 0], sizes = [1, 128], strides = [1, 1]} : vector<8x128xf32> to vector<1x128xf32>
    %10 = vector.extract_strided_slice %6 {offsets = [3, 0], sizes = [1, 128], strides = [1, 1]} : vector<8x128xf32> to vector<1x128xf32>
    %11 = vector.extract_strided_slice %6 {offsets = [4, 0], sizes = [1, 128], strides = [1, 1]} : vector<8x128xf32> to vector<1x128xf32>
    %12 = vector.extract_strided_slice %6 {offsets = [5, 0], sizes = [1, 128], strides = [1, 1]} : vector<8x128xf32> to vector<1x128xf32>
    %c0_11 = arith.constant 0 : index
    %c0_12 = arith.constant 0 : index
    %13 = vector.load %arg11[%c0_11, %c0_12] : memref<8x256xf32, #tpu.memory_space<vmem>>, vector<8x256xf32>
    %14 = vector.extract_strided_slice %13 {offsets = [0, 0], sizes = [1, 256], strides = [1, 1]} : vector<8x256xf32> to vector<1x256xf32>
    %c0_13 = arith.constant 0 : index
    %c0_14 = arith.constant 0 : index
    %15 = vector.load %arg2[%c0_13, %c0_14] : memref<128x384xbf16, #tpu.memory_space<vmem>>, vector<128x384xbf16>
    %cst = arith.constant dense<0.000000e+00> : vector<16x384xf32>
    %16 = tpu.matmul %1, %15, %cst {dimension_numbers = #tpu.dot_dimension_numbers<[1], [0], [0], [1], [0, 0, 1, 1], [], []>} : vector<16x128xbf16>, vector<128x384xbf16>, vector<16x384xf32> -> vector<16x384xf32>
    %17 = vector.extract_strided_slice %16 {offsets = [0, 0], sizes = [16, 128], strides = [1, 1]} : vector<16x384xf32> to vector<16x128xf32>
    %18 = vector.extract_strided_slice %16 {offsets = [0, 128], sizes = [16, 128], strides = [1, 1]} : vector<16x384xf32> to vector<16x128xf32>
    %19 = vector.extract_strided_slice %16 {offsets = [0, 256], sizes = [16, 128], strides = [1, 1]} : vector<16x384xf32> to vector<16x128xf32>
    %20 = arith.mulf %17, %18 : vector<16x128xf32>
    %c127_i32 = arith.constant 127 : i32
    %21 = tpu.dynamic_rotate %20 by %c127_i32 dim 1 : vector<16x128xf32>, i32 -> vector<16x128xf32>
    %22 = arith.maximumf %20, %21 : vector<16x128xf32>
    %c126_i32 = arith.constant 126 : i32
    %23 = tpu.dynamic_rotate %22 by %c126_i32 dim 1 : vector<16x128xf32>, i32 -> vector<16x128xf32>
    %24 = arith.maximumf %22, %23 : vector<16x128xf32>
    %c124_i32 = arith.constant 124 : i32
    %25 = tpu.dynamic_rotate %24 by %c124_i32 dim 1 : vector<16x128xf32>, i32 -> vector<16x128xf32>
    %26 = arith.maximumf %24, %25 : vector<16x128xf32>
    %27 = arith.truncf %26 : vector<16x128xf32> to vector<16x128xbf16>
    %cst_15 = arith.constant dense<0.000000e+00> : vector<16x128xf32>
    %28 = tpu.matmul %27, %3, %cst_15 {dimension_numbers = #tpu.dot_dimension_numbers<[1], [0], [0], [1], [0, 0, 1, 1], [], []>} : vector<16x128xbf16>, vector<128x128xbf16>, vector<16x128xf32> -> vector<16x128xf32>
    %29 = arith.subf %20, %28 : vector<16x128xf32>
    %30 = math.exp %29 : vector<16x128xf32>
    %31 = arith.truncf %30 : vector<16x128xf32> to vector<16x128xbf16>
    %cst_16 = arith.constant dense<0.000000e+00> : vector<16x128xf32>
    %32 = tpu.matmul %31, %2, %cst_16 {dimension_numbers = #tpu.dot_dimension_numbers<[1], [0], [0], [1], [0, 0, 1, 1], [], []>} : vector<16x128xbf16>, vector<128x128xbf16>, vector<16x128xf32> -> vector<16x128xf32>
    %33 = arith.mulf %19, %30 : vector<16x128xf32>
    %34 = tpu.reciprocal %32 {approx = true} : vector<16x128xf32> -> vector<16x128xf32>
    %35 = arith.mulf %33, %34 : vector<16x128xf32>
    %36 = arith.truncf %35 : vector<16x128xf32> to vector<16x128xbf16>
    %c0_17 = arith.constant 0 : index
    %c0_18 = arith.constant 0 : index
    %37 = vector.load %arg3[%c0_17, %c0_18] : memref<128x128xbf16, #tpu.memory_space<vmem>>, vector<128x128xbf16>
    %cst_19 = arith.constant dense<0.000000e+00> : vector<16x128xf32>
    %38 = tpu.matmul %36, %37, %cst_19 {dimension_numbers = #tpu.dot_dimension_numbers<[1], [0], [0], [1], [0, 0, 1, 1], [], []>} : vector<16x128xbf16>, vector<128x128xbf16>, vector<16x128xf32> -> vector<16x128xf32>
    %39 = vector.broadcast %7 : vector<1x128xf32> to vector<16x128xf32>
    %40 = arith.addf %38, %39 : vector<16x128xf32>
    %41 = arith.addf %0, %40 : vector<16x128xf32>
    %42 = arith.truncf %41 : vector<16x128xf32> to vector<16x128xbf16>
    %43 = arith.extf %42 : vector<16x128xbf16> to vector<16x128xf32>
    %44 = arith.subf %41, %43 : vector<16x128xf32>
    %45 = arith.truncf %44 : vector<16x128xf32> to vector<16x128xbf16>
    %46 = tpu.concatenate %42, %45 in 1 : vector<16x128xbf16>, vector<16x128xbf16> -> vector<16x256xbf16>
    %cst_20 = arith.constant dense<0.000000e+00> : vector<16x128xf32>
    %47 = tpu.matmul %46, %4, %cst_20 {dimension_numbers = #tpu.dot_dimension_numbers<[1], [0], [0], [1], [0, 0, 1, 1], [], []>} : vector<16x256xbf16>, vector<256x128xbf16>, vector<16x128xf32> -> vector<16x128xf32>
    %48 = arith.subf %41, %47 : vector<16x128xf32>
    %49 = arith.mulf %48, %48 : vector<16x128xf32>
    %50 = arith.truncf %49 : vector<16x128xf32> to vector<16x128xbf16>
    %cst_21 = arith.constant dense<0.000000e+00> : vector<16x128xf32>
    %51 = tpu.matmul %50, %5, %cst_21 {dimension_numbers = #tpu.dot_dimension_numbers<[1], [0], [0], [1], [0, 0, 1, 1], [], []>} : vector<16x128xbf16>, vector<128x128xbf16>, vector<16x128xf32> -> vector<16x128xf32>
    %cst_22 = arith.constant 9.99999974E-6 : f32
    %52 = vector.broadcast %cst_22 : f32 to vector<16x128xf32>
    %53 = arith.addf %51, %52 : vector<16x128xf32>
    %54 = math.rsqrt %53 : vector<16x128xf32>
    %55 = arith.mulf %48, %54 : vector<16x128xf32>
    %56 = vector.broadcast %8 : vector<1x128xf32> to vector<16x128xf32>
    %57 = arith.mulf %55, %56 : vector<16x128xf32>
    %58 = vector.broadcast %9 : vector<1x128xf32> to vector<16x128xf32>
    %59 = arith.addf %57, %58 : vector<16x128xf32>
    %60 = arith.truncf %59 : vector<16x128xf32> to vector<16x128xbf16>
    %c0_23 = arith.constant 0 : index
    %c0_24 = arith.constant 0 : index
    %61 = vector.load %arg4[%c0_23, %c0_24] : memref<128x256xbf16, #tpu.memory_space<vmem>>, vector<128x256xbf16>
    %cst_25 = arith.constant dense<0.000000e+00> : vector<16x256xf32>
    %62 = tpu.matmul %60, %61, %cst_25 {dimension_numbers = #tpu.dot_dimension_numbers<[1], [0], [0], [1], [0, 0, 1, 1], [], []>} : vector<16x128xbf16>, vector<128x256xbf16>, vector<16x256xf32> -> vector<16x256xf32>
    %63 = vector.broadcast %14 : vector<1x256xf32> to vector<16x256xf32>
    %64 = arith.addf %62, %63 : vector<16x256xf32>
    %cst_26 = arith.constant 0.000000e+00 : f32
    %65 = vector.broadcast %cst_26 : f32 to vector<16x256xf32>
    %66 = arith.maximumf %64, %65 : vector<16x256xf32>
    %67 = arith.truncf %66 : vector<16x256xf32> to vector<16x256xbf16>
    %c0_27 = arith.constant 0 : index
    %c0_28 = arith.constant 0 : index
    %68 = vector.load %arg5[%c0_27, %c0_28] : memref<256x128xbf16, #tpu.memory_space<vmem>>, vector<256x128xbf16>
    %cst_29 = arith.constant dense<0.000000e+00> : vector<16x128xf32>
    %69 = tpu.matmul %67, %68, %cst_29 {dimension_numbers = #tpu.dot_dimension_numbers<[1], [0], [0], [1], [0, 0, 1, 1], [], []>} : vector<16x256xbf16>, vector<256x128xbf16>, vector<16x128xf32> -> vector<16x128xf32>
    %70 = vector.broadcast %10 : vector<1x128xf32> to vector<16x128xf32>
    %71 = arith.addf %69, %70 : vector<16x128xf32>
    %72 = arith.addf %59, %71 : vector<16x128xf32>
    %73 = arith.truncf %72 : vector<16x128xf32> to vector<16x128xbf16>
    %74 = arith.extf %73 : vector<16x128xbf16> to vector<16x128xf32>
    %75 = arith.subf %72, %74 : vector<16x128xf32>
    %76 = arith.truncf %75 : vector<16x128xf32> to vector<16x128xbf16>
    %77 = tpu.concatenate %73, %76 in 1 : vector<16x128xbf16>, vector<16x128xbf16> -> vector<16x256xbf16>
    %cst_30 = arith.constant dense<0.000000e+00> : vector<16x128xf32>
    %78 = tpu.matmul %77, %4, %cst_30 {dimension_numbers = #tpu.dot_dimension_numbers<[1], [0], [0], [1], [0, 0, 1, 1], [], []>} : vector<16x256xbf16>, vector<256x128xbf16>, vector<16x128xf32> -> vector<16x128xf32>
    %79 = arith.subf %72, %78 : vector<16x128xf32>
    %80 = arith.mulf %79, %79 : vector<16x128xf32>
    %81 = arith.truncf %80 : vector<16x128xf32> to vector<16x128xbf16>
    %cst_31 = arith.constant dense<0.000000e+00> : vector<16x128xf32>
    %82 = tpu.matmul %81, %5, %cst_31 {dimension_numbers = #tpu.dot_dimension_numbers<[1], [0], [0], [1], [0, 0, 1, 1], [], []>} : vector<16x128xbf16>, vector<128x128xbf16>, vector<16x128xf32> -> vector<16x128xf32>
    %cst_32 = arith.constant 9.99999974E-6 : f32
    %83 = vector.broadcast %cst_32 : f32 to vector<16x128xf32>
    %84 = arith.addf %82, %83 : vector<16x128xf32>
    %85 = math.rsqrt %84 : vector<16x128xf32>
    %86 = arith.mulf %79, %85 : vector<16x128xf32>
    %87 = vector.broadcast %11 : vector<1x128xf32> to vector<16x128xf32>
    %88 = arith.mulf %86, %87 : vector<16x128xf32>
    %89 = vector.broadcast %12 : vector<1x128xf32> to vector<16x128xf32>
    %90 = arith.addf %88, %89 : vector<16x128xf32>
    %c0_33 = arith.constant 0 : index
    %c0_34 = arith.constant 0 : index
    %91 = vector.load %arg12[%c0_33, %c0_34] : memref<16x128xf32, #tpu.memory_space<vmem>>, vector<16x128xf32>
    tpu.vector_store %arg12[%c0_33, %c0_34], %90 {strides = array<i32>} : memref<16x128xf32, #tpu.memory_space<vmem>>, vector<16x128xf32>,
    return
  }
  func.func @transform_0(%arg0: i32) -> (i32, i32) {
    %c0_i32 = arith.constant 0 : i32
    %c0_i32_0 = arith.constant 0 : i32
    return %arg0, %c0_i32 : i32, i32
  }
  func.func @transform_1(%arg0: i32) -> (i32, i32) {
    %c0_i32 = arith.constant 0 : i32
    %c0_i32_0 = arith.constant 0 : i32
    %c0_i32_1 = arith.constant 0 : i32
    return %c0_i32, %c0_i32_0 : i32, i32
  }
  func.func @transform_2(%arg0: i32) -> (i32, i32) {
    %c0_i32 = arith.constant 0 : i32
    %c0_i32_0 = arith.constant 0 : i32
    %c0_i32_1 = arith.constant 0 : i32
    return %c0_i32, %c0_i32_0 : i32, i32
  }
  func.func @transform_3(%arg0: i32) -> (i32, i32) {
    %c0_i32 = arith.constant 0 : i32
    %c0_i32_0 = arith.constant 0 : i32
    %c0_i32_1 = arith.constant 0 : i32
    return %c0_i32, %c0_i32_0 : i32, i32
  }
  func.func @transform_4(%arg0: i32) -> (i32, i32) {
    %c0_i32 = arith.constant 0 : i32
    %c0_i32_0 = arith.constant 0 : i32
    %c0_i32_1 = arith.constant 0 : i32
    return %c0_i32, %c0_i32_0 : i32, i32
  }
  func.func @transform_5(%arg0: i32) -> (i32, i32) {
    %c0_i32 = arith.constant 0 : i32
    %c0_i32_0 = arith.constant 0 : i32
    %c0_i32_1 = arith.constant 0 : i32
    return %c0_i32, %c0_i32_0 : i32, i32
  }
  func.func @transform_6(%arg0: i32) -> (i32, i32) {
    %c0_i32 = arith.constant 0 : i32
    %c0_i32_0 = arith.constant 0 : i32
    %c0_i32_1 = arith.constant 0 : i32
    return %c0_i32, %c0_i32_0 : i32, i32
  }
  func.func @transform_7(%arg0: i32) -> (i32, i32) {
    %c0_i32 = arith.constant 0 : i32
    %c0_i32_0 = arith.constant 0 : i32
    %c0_i32_1 = arith.constant 0 : i32
    return %c0_i32, %c0_i32_0 : i32, i32
  }
  func.func @transform_8(%arg0: i32) -> (i32, i32) {
    %c0_i32 = arith.constant 0 : i32
    %c0_i32_0 = arith.constant 0 : i32
    %c0_i32_1 = arith.constant 0 : i32
    return %c0_i32, %c0_i32_0 : i32, i32
  }
  func.func @transform_9(%arg0: i32) -> (i32, i32) {
    %c0_i32 = arith.constant 0 : i32
    %c0_i32_0 = arith.constant 0 : i32
    %c0_i32_1 = arith.constant 0 : i32
    return %c0_i32, %c0_i32_0 : i32, i32
  }
  func.func @transform_10(%arg0: i32) -> (i32, i32) {
    %c0_i32 = arith.constant 0 : i32
    %c0_i32_0 = arith.constant 0 : i32
    %c0_i32_1 = arith.constant 0 : i32
    return %c0_i32, %c0_i32_0 : i32, i32
  }
  func.func @transform_11(%arg0: i32) -> (i32, i32) {
    %c0_i32 = arith.constant 0 : i32
    %c0_i32_0 = arith.constant 0 : i32
    return %arg0, %c0_i32 : i32, i32
  }
}

</mosaic_0001>

<bundles_post_ra>
// kernel: tpu_custom_call.1
= control target key start
LH: loop header
LB: loop body
LE: loop exit
PB: predicated region body
PF: predicated region fallthrough
CT: control target
= control target key end

     0   :  { %16 = vsyncpa [#allocation3], 0  ;;  %s2462_s0 = inlined_call_operand.hbm [shape: f32[16,128], index: 0, kind: input, shape index: {}, may-alias: {0,11}]   ;;  %s2463_s1 = inlined_call_operand.hbm [shape: bf16[128,384], index: 1, kind: input, shape index: {}]   ;;  %s2464_s2 = inlined_call_operand.hbm [shape: bf16[128,128], index: 2, kind: input, shape index: {}]   ;;  %s2465_s3 = inlined_call_operand.hbm [shape: bf16[128,256], index: 3, kind: input, shape index: {}]   ;;  %s2466_s4 = inlined_call_operand.hbm [shape: bf16[256,128], index: 4, kind: input, shape index: {}]   ;;  %s2467_s5 = inlined_call_operand.hbm [shape: bf16[128,128], index: 5, kind: input, shape index: {}]   ;;  %s2468_s6 = inlined_call_operand.hbm [shape: bf16[128,128], index: 6, kind: input, shape index: {}]   ;;  %s2469_s7 = inlined_call_operand.hbm [shape: bf16[256,128], index: 7, kind: input, shape index: {}]   ;;  %s2470_s8 = inlined_call_operand.hbm [shape: bf16[128,128], index: 8, kind: input, shape index: {}]   ;;  %s2471_s9 = inlined_call_operand.vmem [shape: f32[8,128], index: 9, kind: input, shape index: {}]   ;;  %s2472_s10 = inlined_call_operand.vmem [shape: f32[8,256], index: 10, kind: input, shape index: {}]   ;;  %s2473_s11 = inlined_call_operand.hbm [shape: f32[16,128], index: 11, kind: output, shape index: {}, may-alias: {0,11}]  }
   0x1   :  { %17 = vsyncpa [#allocation6], 0 }
   0x2   :  { %18 = vsyncpa [#allocation9], 0 }
   0x3   :  { %19 = vsyncpa [#allocation12], 0 }
   0x4   :  { %20 = vsyncpa [#allocation15], 0  ;;  %s39_s19 = sshll.u32 %s2463_s1, 4  ;;  %s40_s19 = int_to_ptr.hbm [resolvable:$true] %s39_s19 }
   0x5   :  { %21 = vsyncpa [#allocation4], 0  ;;  %s2180_s20 = smov [#allocation5]   ;;  %s2181_s22 = smov 192  }
   0x6   :  { %s41_s21 = sshll.u32 %s2180_s20, 4  ;;  %s2182_s23 = smov 12   ;;  %s42_s21 = int_to_ptr.vmem [resolvable:$true] %s41_s21 }
   0x7   :  { %47 = dma.hbm_to_vmem [thread:$0]  %s40_s19, 3072, %s42_s21, [#allocation6], %s2181_s22, %s2181_s22, %s2182_s23  }
   0x8   :  { %s65_s26 = sshll.u32 %s2465_s3, 4  ;;  %s2183_s27 = smov [#allocation8]   ;;  %s66_s26 = int_to_ptr.hbm [resolvable:$true] %s65_s26 }
   0x9   :  { %s67_s28 = sshll.u32 %s2183_s27, 4  ;;  %s2184_s29 = smov 128   ;;  %s68_s28 = int_to_ptr.vmem [resolvable:$true] %s67_s28 }
   0xa   :  { %s2185_s30 = smov 8   ;;  %s91_s13 = sshll.u32 %s2467_s5, 4  ;;  %s92_s13 = int_to_ptr.hbm [resolvable:$true] %s91_s13 }
   0xb   :  { %73 = dma.hbm_to_vmem [thread:$0]  %s66_s26, 2048, %s68_s28, [#allocation9], %s2184_s29, %s2184_s29, %s2185_s30  }
   0xc   :  { %s2186_s14 = smov [#allocation11]   ;;  %s117_s17 = sshll.u32 %s2469_s7, 4  ;;  %s118_s17 = int_to_ptr.hbm [resolvable:$true] %s117_s17 }
   0xd   :  { %s93_s15 = sshll.u32 %s2186_s14, 4  ;;  %s2187_s18 = smov 64   ;;  %s94_s15 = int_to_ptr.vmem [resolvable:$true] %s93_s15 }
   0xe   :  { %s2188_s19 = smov 4   ;;  %s2189_s20 = smov [#allocation14]  }
   0xf   :  { %99 = dma.hbm_to_vmem [thread:$0]  %s92_s13, 1024, %s94_s15, [#allocation12], %s2187_s18, %s2187_s18, %s2188_s19  }
  0x10   :  { %s119_s21 = sshll.u32 %s2189_s20, 4  ;;  %s26_s5 = sshll.u32 %s2462_s0, 4  ;;  %s120_s21 = int_to_ptr.vmem [resolvable:$true] %s119_s21  ;;  %s27_s5 = int_to_ptr.hbm [resolvable:$true] %s26_s5 }
  0x11   :  { %125 = dma.hbm_to_vmem [thread:$0]  %s118_s17, 2048, %s120_s21, [#allocation15], %s2187_s18, %s2187_s18, %s2188_s19  }
  0x12   :  { %s52_s25 = sshll.u32 %s2464_s2, 4  ;;  %s2190_s26 = smov [#allocation2]   ;;  %s53_s25 = int_to_ptr.hbm [resolvable:$true] %s52_s25 }
  0x13   :  { %s28_s27 = sshll.u32 %s2190_s26, 4  ;;  %s2191_s28 = smov [#allocation7]   ;;  %s29_s27 = int_to_ptr.vmem [resolvable:$true] %s28_s27 }
  0x14   :  { %34 = dma.hbm_to_vmem [thread:$0]  %s27_s5, 256, %s29_s27, [#allocation3], %s2184_s29, %s2184_s29, %s2185_s30  }
  0x15   :  { %s54_s0 = sshll.u32 %s2191_s28, 4  ;;  %s78_s13 = sshll.u32 %s2466_s4, 4  ;;  %s55_s0 = int_to_ptr.vmem [resolvable:$true] %s54_s0  ;;  %s79_s13 = int_to_ptr.hbm [resolvable:$true] %s78_s13 }
  0x16   :  { %60 = dma.hbm_to_vmem [thread:$0]  %s53_s25, 1024, %s55_s0, [#allocation6], %s2187_s18, %s2187_s18, %s2188_s19  }
  0x17   :  { %s104_s15 = sshll.u32 %s2468_s6, 4  ;;  %s2192_s16 = smov [#allocation10]   ;;  %s105_s15 = int_to_ptr.hbm [resolvable:$true] %s104_s15 }
  0x18   :  { %s80_s3 = sshll.u32 %s2192_s16, 4  ;;  %s2193_s17 = smov [#allocation13]   ;;  %s81_s3 = int_to_ptr.vmem [resolvable:$true] %s80_s3 }
  0x19   :  { %86 = dma.hbm_to_vmem [thread:$0]  %s79_s13, 2048, %s81_s3, [#allocation9], %s2187_s18, %s2187_s18, %s2188_s19  }
  0x1a   :  { %s106_s4 = sshll.u32 %s2193_s17, 4  ;;  %s130_s22 = sshll.u32 %s2470_s8, 4  ;;  %s107_s4 = int_to_ptr.vmem [resolvable:$true] %s106_s4  ;;  %s131_s22 = int_to_ptr.hbm [resolvable:$true] %s130_s22 }
  0x1b   :  { %112 = dma.hbm_to_vmem [thread:$0]  %s105_s15, 1024, %s107_s4, [#allocation12], %s2187_s18, %s2187_s18, %s2188_s19  }
  0x1c   :  { %s2194_s6 = smov [#allocation16]  }
  0x1d   :  { %s132_s23 = sshll.u32 %s2194_s6, 4  ;;  %s133_s23 = int_to_ptr.vmem [resolvable:$true] %s132_s23 }
  0x1e   :  { %138 = dma.hbm_to_vmem [thread:$0]  %s131_s22, 1024, %s133_s23, [#allocation15], %s2187_s18, %s2187_s18, %s2188_s19  }
  0x1f   :  { %2168 = dma.done.wait [#allocation3], 256  }
  0x20   :  { %2169 = vsyncadd [#allocation3], 4294967040 }
  0x21   :  { %2170 = dma.done.wait [#allocation6], 4096  }
  0x22   :  { %2171 = vsyncadd [#allocation6], 4294963200 }
  0x23   :  { %2172 = dma.done.wait [#allocation9], 4096  }
  0x24   :  { %2173 = vsyncadd [#allocation9], 4294963200 }
  0x25   :  { %2174 = dma.done.wait [#allocation12], 2048  }
  0x26   :  { %2175 = vsyncadd [#allocation12], 4294965248 }
  0x27   :  { %2176 = dma.done.wait [#allocation15], 3072  }
  0x28   :  { %2177 = vsyncadd [#allocation15], 4294964224  ;;  %v1444_v0 = vld [vmem:[#allocation5 + $0xa8] sm:$0xf]  ;;  %v1836_v1 = vld [vmem:[#allocation5 + $0xb0] sm:$0xf0] }
  0x29   :  { %v1835_v2 = vld [vmem:[#allocation5 + $0xac] sm:$0xf]  ;;  %v1445_v3 = vor.u32 %v1836_v1, %v1444_v0  ;;  %v1446_v4 = vld [vmem:[#allocation5 + $0xb4] sm:$0xf0]  ;;  %v1432_v5 = vld [vmem:[#allocation5 + $0x90] sm:$0xf] }
  0x2a   :  { %v1833_v6 = vld [vmem:[#allocation5 + $0x98] sm:$0xf0]  ;;  %v1449_v7 = vor.u32 %v1835_v2, %v1446_v4  ;;  %v1832_v8 = vld [vmem:[#allocation5 + $0x94] sm:$0xf]  ;;  %v1434_v9 = vld [vmem:[#allocation5 + $0x9c] sm:$0xf0] }
  0x2b   :  { %425 = vmatpush.bf16.msra.mxu0 %v1445_v3  ;;  %v1433_v10 = vor.u32 %v1833_v6, %v1432_v5  ;;  %v1437_v11 = vor.u32 %v1832_v8, %v1434_v9  ;;  %v1420_v12 = vld [vmem:[#allocation5 + $0x78] sm:$0xf]  ;;  %v1830_v13 = vld [vmem:[#allocation5 + $0x80] sm:$0xf0]  ;;  %v1829_v14 = vld [vmem:[#allocation5 + $0x7c] sm:$0xf] }
  0x2c   :  { %439 = vmatpush.bf16.msra.mxu1 %v1449_v7  ;;  %v1422_v15 = vld [vmem:[#allocation5 + $0x84] sm:$0xf0]  ;;  %v1421_v16 = vor.u32 %v1830_v13, %v1420_v12  ;;  %v1408_v18 = vld [vmem:[#allocation5 + $0x60] sm:$0xf]  ;;  %v1827_v19 = vld [vmem:[#allocation5 + $0x68] sm:$0xf0] }
  0x2d   :  { %v1425_v17 = vor.u32 %v1829_v14, %v1422_v15  ;;  %v1826_v20 = vld [vmem:[#allocation5 + $0x64] sm:$0xf]  ;;  %v1410_v21 = vld [vmem:[#allocation5 + $0x6c] sm:$0xf0]  ;;  %v1409_v22 = vor.u32 %v1827_v19, %v1408_v18  ;;  %v1396_v24 = vld [vmem:[#allocation5 + $0x48] sm:$0xf] }
  0x2e   :  { %v1413_v23 = vor.u32 %v1826_v20, %v1410_v21  ;;  %v1824_v25 = vld [vmem:[#allocation5 + $0x50] sm:$0xf0]  ;;  %v1823_v26 = vld [vmem:[#allocation5 + $0x4c] sm:$0xf]  ;;  %v1398_v27 = vld [vmem:[#allocation5 + $0x54] sm:$0xf0] }
  0x2f   :  { %426 = vmatpush.bf16.msra.mxu0 %v1433_v10  ;;  %v1397_v28 = vor.u32 %v1824_v25, %v1396_v24  ;;  %v1401_v29 = vor.u32 %v1823_v26, %v1398_v27  ;;  %v1384_v30 = vld [vmem:[#allocation5 + $0x30] sm:$0xf]  ;;  %v1821_v31 = vld [vmem:[#allocation5 + $0x38] sm:$0xf0]  ;;  %v1820_v32 = vld [vmem:[#allocation5 + $0x34] sm:$0xf] }
  0x30   :  { %440 = vmatpush.bf16.msra.mxu1 %v1437_v11  ;;  %v1386_v33 = vld [vmem:[#allocation5 + $0x3c] sm:$0xf0]  ;;  %v1385_v34 = vor.u32 %v1821_v31, %v1384_v30  ;;  %v1372_v36 = vld [vmem:[#allocation5 + $0x18] sm:$0xf]  ;;  %v1818_v37 = vld [vmem:[#allocation5 + $0x20] sm:$0xf0] }
  0x31   :  { %v1389_v35 = vor.u32 %v1820_v32, %v1386_v33  ;;  %v1817_v38 = vld [vmem:[#allocation5 + $0x1c] sm:$0xf]  ;;  %v1374_v39 = vld [vmem:[#allocation5 + $0x24] sm:$0xf0]  ;;  %v1373_v40 = vor.u32 %v1818_v37, %v1372_v36  ;;  %v1360_v42 = vld [vmem:[#allocation5] sm:$0xf] }
  0x32   :  { %v1377_v41 = vor.u32 %v1817_v38, %v1374_v39  ;;  %v1815_v43 = vld [vmem:[#allocation5 + $0x8] sm:$0xf0]  ;;  %v1814_v44 = vld [vmem:[#allocation5 + $0x4] sm:$0xf]  ;;  %v1362_v45 = vld [vmem:[#allocation5 + $0xc] sm:$0xf0] }
  0x33   :  { %427 = vmatpush.bf16.msra.mxu0 %v1421_v16  ;;  %v1361_v46 = vor.u32 %v1815_v43, %v1360_v42  ;;  %v2310_v47 = vld [vmem:[#allocation2] sm:$0xff]  ;;  %v2312_v48 = vld [vmem:[#allocation2 + $0x8] sm:$0xff]  ;;  %v1365_v49 = vor.u32 %v1814_v44, %v1362_v45  ;;  %s2195_s8 = smov 127   ;;  %s2196_s18 = smov 126   ;;  %v1834_v6 = vld [vmem:[#allocation5 + $0xa0] sm:$0xf0] }
  0x34   :  { %441 = vmatpush.bf16.msra.mxu1 %v1425_v17  ;;  %v2316_v50 = vpack.c.bf16 %v2312_v48, %v2310_v47  ;;  %v1789_v0 = vld [vmem:[#allocation13 + $0x38] sm:$0xff]  ;;  %v1452_v1 = vld [vmem:[#allocation5 + $0xb0] sm:$0xf]  ;;  %v1428_v8 = vld [vmem:[#allocation5 + $0x80] sm:$0xf]  ;;  %s2197_s19 = smov 124  }
  0x35   :  { %v1837_v2 = vld [vmem:[#allocation5 + $0xb8] sm:$0xf0]  ;;  %536 = vmatpush.bf16.msra.mxu3 %v1789_v0  ;;  %v1788_v3 = vld [vmem:[#allocation13 + $0x30] sm:$0xff]  ;;  %v1440_v5 = vld [vmem:[#allocation5 + $0x98] sm:$0xf]  ;;  %s1341_s1 = sshll.u32 %s2473_s11, 4  ;;  %s1342_s1 = int_to_ptr.hbm [resolvable:$true] %s1341_s1 }
  0x36   :  { %v1453_v4 = vor.u32 %v1837_v2, %v1452_v1  ;;  %v1441_v7 = vor.u32 %v1834_v6, %v1440_v5  ;;  %v1831_v9 = vld [vmem:[#allocation5 + $0x88] sm:$0xf0]  ;;  %v1416_v12 = vld [vmem:[#allocation5 + $0x68] sm:$0xf]  ;;  %v1828_v13 = vld [vmem:[#allocation5 + $0x70] sm:$0xf0] }
  0x37   :  { %428 = vmatpush.bf16.msra.mxu0 %v1409_v22  ;;  %v1787_v10 = vld [vmem:[#allocation13 + $0x28] sm:$0xff]  ;;  %v1429_v11 = vor.u32 %v1831_v9, %v1428_v8  ;;  %v1786_v14 = vld [vmem:[#allocation13 + $0x20] sm:$0xff]  ;;  %v1417_v15 = vor.u32 %v1828_v13, %v1416_v12  ;;  %v1785_v16 = vld [vmem:[#allocation13 + $0x18] sm:$0xff] }
  0x38   :  { %442 = vmatpush.bf16.msra.mxu1 %v1413_v23  ;;  %453 = vmatpush.bf16.msra.mxu2 %v1453_v4  ;;  %v1784_v17 = vld [vmem:[#allocation13 + $0x10] sm:$0xff]  ;;  %v1783_v18 = vld [vmem:[#allocation13 + $0x8] sm:$0xff]  ;;  %v1825_v26 = vld [vmem:[#allocation5 + $0x58] sm:$0xf0] }
  0x39   :  { %537 = vmatpush.bf16.msra.mxu3 %v1788_v3  ;;  %v1404_v25 = vld [vmem:[#allocation5 + $0x50] sm:$0xf]  ;;  %v1822_v30 = vld [vmem:[#allocation5 + $0x40] sm:$0xf0]  ;;  %v1380_v32 = vld [vmem:[#allocation5 + $0x20] sm:$0xf] }
  0x3a   :  { %v1405_v27 = vor.u32 %v1825_v26, %v1404_v25  ;;  %v1819_v33 = vld [vmem:[#allocation5 + $0x28] sm:$0xf0]  ;;  %v1816_v36 = vld [vmem:[#allocation5 + $0x10] sm:$0xf0]  ;;  %v1781_v37 = vld [vmem:[#allocation11 + $0x38] sm:$0xff] }
  0x3b   :  { %429 = vmatpush.bf16.msra.mxu0 %v1397_v28  ;;  %v1782_v28 = vld [vmem:[#allocation13] sm:$0xff]  ;;  %v1780_v38 = vld [vmem:[#allocation11 + $0x30] sm:$0xff]  ;;  %v1841_v5 = vld [vmem:[#allocation7 + $0x18] sm:$0xff] }
  0x3c   :  { %443 = vmatpush.bf16.msra.mxu1 %v1401_v29  ;;  %454 = vmatpush.bf16.msra.mxu2 %v1441_v7  ;;  %v1392_v29 = vld [vmem:[#allocation5 + $0x38] sm:$0xf]  ;;  %v1842_v4 = vld [vmem:[#allocation7 + $0x20] sm:$0xff]  ;;  %v1840_v6 = vld [vmem:[#allocation7 + $0x10] sm:$0xff] }
  0x3d   :  { %538 = vmatpush.bf16.msra.mxu3 %v1787_v10  ;;  %v1393_v31 = vor.u32 %v1822_v30, %v1392_v29  ;;  %v1839_v7 = vld [vmem:[#allocation7 + $0x8] sm:$0xff]  ;;  %v2331_v8 = vld [vmem:[#allocation14 + $0x38] sm:$0xff]  ;;  %v2336_v9 = vld [vmem:[#allocation14 + $0x30] sm:$0xff] }
  0x3e   :  { %v2339_v10 = vld [vmem:[#allocation14 + $0x70] sm:$0xff]  ;;  %v2352_v25 = vld [vmem:[#allocation14 + $0x18] sm:$0xff]  ;;  %v2355_v26 = vld [vmem:[#allocation14 + $0x60] sm:$0xff] }
  0x3f   :  { %430 = vmatpush.bf16.msra.mxu0 %v1385_v34  ;;  %v1381_v34 = vor.u32 %v1819_v33, %v1380_v32  ;;  %v2364_v29 = vld [vmem:[#allocation14 + $0x8] sm:$0xff]  ;;  %v2367_v30 = vld [vmem:[#allocation14 + $0x50] sm:$0xff]  ;;  %v2376_v33 = vld [vmem:[#allocation14 + $0x40] sm:$0xff] }
  0x40   :  { %444 = vmatpush.bf16.msra.mxu1 %v1389_v35  ;;  %455 = vmatpush.bf16.msra.mxu2 %v1429_v11  ;;  %v1368_v35 = vld [vmem:[#allocation5 + $0x8] sm:$0xf] }
  0x41   :  { %539 = vmatpush.bf16.msra.mxu3 %v1786_v14  ;;  %v1369_v39 = vor.u32 %v1816_v36, %v1368_v35  ;;  %v2342_v11 = vld [vmem:[#allocation14 + $0x28] sm:$0xff]  ;;  %v2384_v35 = vld [vmem:[%s2471_s9] sm:$0xff] }
  0x42   :  { %v2372_v32 = vld [vmem:[#allocation14 + $0x48] sm:$0xff]  ;;  %v2387_v36 = vld [vmem:[#allocation16 + $0x30] sm:$0xff] }
  0x43   :  { %431 = vmatpush.bf16.msra.mxu0 %v1373_v40  ;;  %v1779_v40 = vld [vmem:[#allocation11 + $0x28] sm:$0xff] }
  0x44   :  { %445 = vmatpush.bf16.msra.mxu1 %v1377_v41  ;;  %456 = vmatpush.bf16.msra.mxu2 %v1417_v15 }
  0x45   :  { %540 = vmatpush.bf16.msra.mxu3 %v1785_v16 }
  0x47   :  { %432 = vmatpush.bf16.msra.mxu0 %v1361_v46 }
  0x48   :  { %446 = vmatpush.bf16.msra.mxu1 %v1365_v49  ;;  %457 = vmatpush.bf16.msra.mxu2 %v1405_v27  ;;  %v1778_v49 = vld [vmem:[#allocation11 + $0x20] sm:$0xff]  ;;  %v2358_v27 = vld [vmem:[#allocation14 + $0x10] sm:$0xff] }
  0x49   :  { %541 = vmatpush.bf16.msra.mxu3 %v1784_v17 }
  0x4a   :  { %433 = vmatmul.bf16.vlgmr.msra.gmra.mxu0 %v2316_v50 }
  0x4b   :  { %447 = vmatmul.bf16.vlgmr.msra.gmra.mxu1 %v2316_v50  ;;  %605 = vmatpush.bf16.msrb.mxu0 %v1781_v37  ;;  %v642_v37 = vperm.slane %v2384_v35, 0 }
  0x4c   :  { %458 = vmatpush.bf16.msra.mxu2 %v1393_v31  ;;  %v2369_v31 = vld [vmem:[#allocation14] sm:$0xff] }
  0x4d   :  { %542 = vmatpush.bf16.msra.mxu3 %v1783_v18 }
  0x4f   :  { %606 = vmatpush.bf16.msrb.mxu0 %v1780_v38 }
  0x50   :  { %459 = vmatpush.bf16.msra.mxu2 %v1381_v34  ;;  %v2379_v34 = vld [vmem:[#allocation16 + $0x38] sm:$0xff] }
  0x51   :  { %543 = vmatpush.bf16.msra.mxu3 %v1782_v28  ;;  %v2361_v28 = vld [vmem:[#allocation14 + $0x58] sm:$0xff] }
  0x53   :  { %607 = vmatpush.bf16.msrb.mxu0 %v1779_v40 }
  0x54   :  { %460 = vmatpush.bf16.msra.mxu2 %v1369_v39 }
  0x57   :  { %461 = vmatmul.bf16.vlgmr.msra.gmra.mxu2 %v2316_v50  ;;  %608 = vmatpush.bf16.msrb.mxu0 %v1778_v49  ;;  %v1844_v50 = vld [vmem:[#allocation7 + $0x30] sm:$0xff] }
  0x58   :  { %823 = vmatpush.bf16.msrb.mxu2 %v2331_v8 }
  0x5c   :  { %824 = vmatpush.bf16.msrb.mxu2 %v2336_v9 }
  0x60   :  { %825 = vmatpush.bf16.msrb.mxu2 %v2342_v11 }
  0xc7   :  { %v434_v51 = vpop.f32.mrf.mxu0 }
  0xc8   :  { %v448_v52 = vpop.f32.mrf.mxu1 }
  0xc9   :  { %v2320_v55 = vmul.f32 %v448_v52, %v434_v51  ;;  %v1777_v51 = vld [vmem:[#allocation11 + $0x18] sm:$0xff]  ;;  %v1776_v52 = vld [vmem:[#allocation11 + $0x10] sm:$0xff] }
  0xca   :  { %609 = vmatpush.bf16.msrb.mxu0 %v1777_v51 }
  0xce   :  { %610 = vmatpush.bf16.msrb.mxu0 %v1776_v52 }
  0xcf   :  { %v436_v53 = vpop.f32.mrf.mxu0 }
  0xd0   :  { %v450_v54 = vpop.f32.mrf.mxu1 }
  0xd1   :  { %v2322_v56 = vmul.f32 %v450_v54, %v436_v53  ;;  %v1775_v53 = vld [vmem:[#allocation11 + $0x8] sm:$0xff]  ;;  %v1774_v54 = vld [vmem:[#allocation11] sm:$0xff] }
  0xd2   :  { %611 = vmatpush.bf16.msrb.mxu0 %v1775_v53 }
  0xd3   :  { %v1897_v57 = vpack.i.bf16 %v2322_v56, %v2320_v55 }
  0xd5   :  { %1898 = vrot.lane.b32.xlu0 %v1897_v57, %s2195_s8  ;;  %v1845_v57 = vld [vmem:[#allocation7 + $0x38] sm:$0xff] }
  0xd6   :  { %612 = vmatpush.bf16.msrb.mxu0 %v1774_v54  ;;  %691 = vmatpush.bf16.msrb.mxu1 %v1845_v57 }
  0xda   :  { %692 = vmatpush.bf16.msrb.mxu1 %v1844_v50  ;;  %v462_v13 = vpop.f32.mrf.mxu2  ;;  %904 = vmatpush.bf16.msra.mxu0 %v2379_v34 }
  0xde   :  { %905 = vmatpush.bf16.msra.mxu0 %v2387_v36 }
  0xe2   :  { %v464_v15 = vpop.f32.mrf.mxu2 }
 0x147   :  { %v1899_v58 = vpop.permute.xlu0 %1898 }
 0x148   :  { %v1901_v59 = vunpack.i.h.bf16 %v1899_v58  ;;  %v1900_v60 = vunpack.i.l.bf16 %v1899_v58  ;;  %v1843_v58 = vld [vmem:[#allocation7 + $0x28] sm:$0xff] }
 0x149   :  { %693 = vmatpush.bf16.msrb.mxu1 %v1843_v58 }
 0x14a   :  { %v474_v61 = vmax.f32 %v2322_v56, %v1901_v59  ;;  %v473_v62 = vmax.f32 %v2320_v55, %v1900_v60 }
 0x14c   :  { %v1902_v63 = vpack.i.bf16 %v474_v61, %v473_v62 }
 0x14d   :  { %694 = vmatpush.bf16.msrb.mxu1 %v1842_v4 }
 0x14e   :  { %1903 = vrot.lane.b32.xlu0 %v1902_v63, %s2196_s18 }
 0x151   :  { %695 = vmatpush.bf16.msrb.mxu1 %v1841_v5 }
 0x155   :  { %696 = vmatpush.bf16.msrb.mxu1 %v1840_v6 }
 0x159   :  { %697 = vmatpush.bf16.msrb.mxu1 %v1839_v7 }
 0x1c0   :  { %v1904_v19 = vpop.permute.xlu0 %1903 }
 0x1c1   :  { %v1906_v20 = vunpack.i.h.bf16 %v1904_v19  ;;  %v1905_v21 = vunpack.i.l.bf16 %v1904_v19 }
 0x1c3   :  { %v480_v22 = vmax.f32 %v474_v61, %v1906_v20  ;;  %v479_v23 = vmax.f32 %v473_v62, %v1905_v21 }
 0x1c5   :  { %v1907_v24 = vpack.i.bf16 %v480_v22, %v479_v23 }
 0x1c7   :  { %1908 = vrot.lane.b32.xlu1 %v1907_v24, %s2197_s19  ;;  %v2349_v24 = vld [vmem:[#allocation14 + $0x68] sm:$0xff] }
 0x239   :  { %v1909_v41 = vpop.permute.xlu1 %1908 }
 0x23a   :  { %v1911_v42 = vunpack.i.h.bf16 %v1909_v41  ;;  %v1910_v43 = vunpack.i.l.bf16 %v1909_v41 }
 0x23c   :  { %v486_v44 = vmax.f32 %v480_v22, %v1911_v42  ;;  %v485_v45 = vmax.f32 %v479_v23, %v1910_v43  ;;  %v2346_v23 = vld [vmem:[#allocation14 + $0x20] sm:$0xff] }
 0x23d   :  { %826 = vmatpush.bf16.msrb.mxu2 %v2346_v23 }
 0x23e   :  { %v487_v46 = vpack.c.bf16 %v486_v44, %v485_v45 }
 0x240   :  { %544 = vmatmul.bf16.vlgmr.msra.gmra.mxu3 %v487_v46 }
 0x241   :  { %827 = vmatpush.bf16.msrb.mxu2 %v2352_v25 }
 0x245   :  { %828 = vmatpush.bf16.msrb.mxu2 %v2358_v27 }
 0x249   :  { %829 = vmatpush.bf16.msrb.mxu2 %v2364_v29 }
 0x24d   :  { %830 = vmatpush.bf16.msrb.mxu2 %v2369_v31 }
 0x2c3   :  { %v545_v59 = vpop.f32.mrf.mxu3 }
 0x2c4   :  { %v550_v60 = vsub.f32 %v2320_v55, %v545_v59  ;;  %v1838_v55 = vld [vmem:[#allocation7] sm:$0xff] }
 0x2c5   :  { %698 = vmatpush.bf16.msrb.mxu1 %v1838_v55 }
 0x2c6   :  { %v552_v61 = vmul.f32 1.442695, %v550_v60 }
 0x2c8   :  { %1912 = vpow2.f32 %v552_v61 }
 0x2cb   :  { %v547_v62 = vpop.f32.mrf.mxu3 }
 0x2cc   :  { %v551_v63 = vsub.f32 %v2322_v56, %v547_v62  ;;  %v2333_v56 = vld [vmem:[#allocation14 + $0x78] sm:$0xff]  ;;  %v2396_v62 = vld [vmem:[#allocation16 + $0x20] sm:$0xff] }
 0x2cd   :  { %837 = vmatpush.bf16.msrb.mxu3 %v2333_v56 }
 0x2ce   :  { %v554_v0 = vmul.f32 1.442695, %v551_v63  ;;  %v1913_v1 = vpop.eup %1912  ;;  %v2402_v63 = vld [vmem:[#allocation16 + $0x10] sm:$0xff] }
 0x2cf   :  { %v619_v17 = vmul.f32 %v1913_v1, %v462_v13 }
 0x2d0   :  { %1914 = vpow2.f32 %v554_v0  ;;  %v2405_v0 = vld [vmem:[#allocation16 + $0x8] sm:$0xff] }
 0x2d1   :  { %838 = vmatpush.bf16.msrb.mxu3 %v2339_v10 }
 0x2d5   :  { %839 = vmatpush.bf16.msrb.mxu3 %v2349_v24 }
 0x2d6   :  { %v1915_v2 = vpop.eup %1914 }
 0x2d7   :  { %v556_v3 = vpack.c.bf16 %v1915_v2, %v1913_v1  ;;  %v620_v18 = vmul.f32 %v1915_v2, %v464_v15  ;;  %v2408_v1 = vld [vmem:[#allocation16] sm:$0xff] }
 0x2d9   :  { %613 = vmatmul.bf16.vlgmr.msrb.gmra.mxu0 %v556_v3  ;;  %840 = vmatpush.bf16.msrb.mxu3 %v2355_v26 }
 0x2dd   :  { %841 = vmatpush.bf16.msrb.mxu3 %v2361_v28 }
 0x2e1   :  { %842 = vmatpush.bf16.msrb.mxu3 %v2367_v30 }
 0x2e5   :  { %843 = vmatpush.bf16.msrb.mxu3 %v2372_v32 }
 0x2e9   :  { %844 = vmatpush.bf16.msrb.mxu3 %v2376_v33 }
 0x356   :  { %v614_v12 = vpop.f32.mrf.mxu0 }
 0x357   :  { %1916 = vrcp.f32 %v614_v12 }
 0x35d   :  { %v1917_v16 = vpop.eup %1916 }
 0x35e   :  { %v616_v14 = vpop.f32.mrf.mxu0  ;;  %v623_v20 = vmul.f32 %v1917_v16, %v619_v17  ;;  %v1704_v16 = vld [vmem:[#allocation8 + $0x70] sm:$0xf]  ;;  %v1861_v17 = vld [vmem:[#allocation8 + $0x74] sm:$0xf0] }
 0x35f   :  { %1918 = vrcp.f32 %v616_v14 }
 0x365   :  { %v1919_v19 = vpop.eup %1918 }
 0x366   :  { %v624_v21 = vmul.f32 %v1919_v19, %v620_v18  ;;  %v1860_v18 = vld [vmem:[#allocation8 + $0x74] sm:$0xf]  ;;  %v1705_v19 = vor.u32 %v1861_v17, %v1704_v16  ;;  %v1849_v16 = vld [vmem:[#allocation8 + $0x14] sm:$0xf0] }
 0x367   :  { %v1848_v17 = vld [vmem:[#allocation8 + $0x14] sm:$0xf] }
 0x368   :  { %v625_v22 = vpack.c.bf16 %v624_v21, %v623_v20  ;;  %v1706_v20 = vld [vmem:[#allocation8 + $0x78] sm:$0xf0]  ;;  %1045 = vmatpush.bf16.msra.mxu1 %v1705_v19 }
 0x369   :  { %v1709_v21 = vor.u32 %v1860_v18, %v1706_v20  ;;  %v1658_v19 = vld [vmem:[#allocation8 + $0x18] sm:$0xf0] }
 0x36a   :  { %699 = vmatmul.bf16.vlgmr.msrb.gmra.mxu1 %v625_v22  ;;  %v1696_v22 = vld [vmem:[#allocation8 + $0x60] sm:$0xf]  ;;  %v1661_v20 = vor.u32 %v1848_v17, %v1658_v19 }
 0x36b   :  { %1059 = vmatpush.bf16.msra.mxu2 %v1709_v21  ;;  %v1648_v21 = vld [vmem:[#allocation8] sm:$0xf] }
 0x3e7   :  { %v700_v38 = vpop.f32.mrf.mxu1 }
 0x3e8   :  { %v701_v39 = vadd.f32 %v700_v38, %v642_v37  ;;  %v1858_v38 = vld [vmem:[#allocation8 + $0x64] sm:$0xf] }
 0x3ea   :  { %v705_v40 = vadd.f32 %v701_v39, %v2310_v47  ;;  %v2393_v47 = vld [vmem:[#allocation16 + $0x28] sm:$0xff] }
 0x3eb   :  { %906 = vmatpush.bf16.msra.mxu0 %v2393_v47 }
 0x3ec   :  { %v707_v41 = vpack.c.bf16 %v705_v40, %v705_v40 }
 0x3ee   :  { %v709_v44 = vunpack.c.l.bf16 %v707_v41  ;;  %v717_v51 = vunpack.c.l.b16 %v707_v41 }
 0x3ef   :  { %v702_v42 = vpop.f32.mrf.mxu1  ;;  %907 = vmatpush.bf16.msra.mxu0 %v2396_v62 }
 0x3f0   :  { %v703_v43 = vadd.f32 %v702_v42, %v642_v37  ;;  %v711_v49 = vsub.f32 %v705_v40, %v709_v44  ;;  %v1859_v37 = vld [vmem:[#allocation8 + $0x64] sm:$0xf0]  ;;  %v1688_v42 = vld [vmem:[#allocation8 + $0x50] sm:$0xf]  ;;  %v1856_v44 = vld [vmem:[#allocation8 + $0x54] sm:$0xf] }
 0x3f1   :  { %v1697_v39 = vor.u32 %v1859_v37, %v1696_v22  ;;  %v1847_v22 = vld [vmem:[#allocation8 + $0x4] sm:$0xf0]  ;;  %v1846_v37 = vld [vmem:[#allocation8 + $0x4] sm:$0xf] }
 0x3f2   :  { %v706_v45 = vadd.f32 %v703_v43, %v2312_v48  ;;  %v713_v50 = vpack.c.bf16 %v711_v49, %v711_v49  ;;  %v2399_v48 = vld [vmem:[#allocation16 + $0x18] sm:$0xff] }
 0x3f3   :  { %908 = vmatpush.bf16.msra.mxu0 %v2399_v48  ;;  %1046 = vmatpush.bf16.msra.mxu1 %v1697_v39  ;;  %v1857_v43 = vld [vmem:[#allocation8 + $0x54] sm:$0xf0]  ;;  %v1649_v39 = vor.u32 %v1847_v22, %v1648_v21 }
 0x3f4   :  { %v708_v46 = vpack.c.bf16 %v706_v45, %v706_v45  ;;  %v723_v59 = vunpack.c.l.b16 %v713_v50 }
 0x3f6   :  { %v718_v52 = vunpack.c.l.b16 %v708_v46  ;;  %v710_v53 = vunpack.c.l.bf16 %v708_v46  ;;  %v1690_v46 = vld [vmem:[#allocation8 + $0x58] sm:$0xf0] }
 0x3f7   :  { %909 = vmatpush.bf16.msra.mxu0 %v2402_v63  ;;  %v1693_v49 = vor.u32 %v1856_v44, %v1690_v46  ;;  %v1877_v44 = vld [vmem:[#allocation10 + $0x78] sm:$0xff]  ;;  %v1876_v46 = vld [vmem:[#allocation10 + $0x70] sm:$0xff] }
 0x3f8   :  { %v719_v54 = vpack.c.b16 %v718_v52, %v717_v51  ;;  %v712_v57 = vsub.f32 %v706_v45, %v710_v53  ;;  %v1680_v51 = vld [vmem:[#allocation8 + $0x40] sm:$0xf]  ;;  %v1855_v52 = vld [vmem:[#allocation8 + $0x44] sm:$0xf0]  ;;  %v1854_v53 = vld [vmem:[#allocation8 + $0x44] sm:$0xf] }
 0x3fa   :  { %831 = vmatmul.bf16.vlgmr.msrb.gmra.mxu2 %v719_v54  ;;  %v714_v58 = vpack.c.bf16 %v712_v57, %v712_v57  ;;  %v1681_v54 = vor.u32 %v1855_v52, %v1680_v51  ;;  %v1682_v57 = vld [vmem:[#allocation8 + $0x48] sm:$0xf0] }
 0x3fb   :  { %910 = vmatpush.bf16.msra.mxu0 %v2405_v0  ;;  %v1685_v50 = vor.u32 %v1854_v53, %v1682_v57 }
 0x3fc   :  { %v724_v60 = vunpack.c.l.b16 %v714_v58  ;;  %v1672_v58 = vld [vmem:[#allocation8 + $0x30] sm:$0xf] }
 0x3fe   :  { %v725_v61 = vpack.c.b16 %v724_v60, %v723_v59  ;;  %v1853_v59 = vld [vmem:[#allocation8 + $0x34] sm:$0xf0]  ;;  %v1852_v60 = vld [vmem:[#allocation8 + $0x34] sm:$0xf] }
 0x3ff   :  { %911 = vmatpush.bf16.msra.mxu0 %v2408_v1 }
 0x400   :  { %845 = vmatmul.bf16.vlgmr.msrb.gmra.mxu3 %v725_v61  ;;  %v1673_v61 = vor.u32 %v1853_v59, %v1672_v58 }
 0x403   :  { %1222 = vmatpush.bf16.msrb.mxu0 %v1877_v44 }
 0x407   :  { %1223 = vmatpush.bf16.msrb.mxu0 %v1876_v46 }
 0x47d   :  { %v832_v2 = vpop.f32.mrf.mxu2 }
 0x483   :  { %v846_v3 = vpop.f32.mrf.mxu3 }
 0x484   :  { %v847_v4 = vadd.f32 %v846_v3, %v832_v2  ;;  %v1674_v2 = vld [vmem:[#allocation8 + $0x38] sm:$0xf0] }
 0x485   :  { %v834_v5 = vpop.f32.mrf.mxu2  ;;  %v1677_v3 = vor.u32 %v1852_v60, %v1674_v2 }
 0x486   :  { %v2411_v7 = vsub.f32 %v705_v40, %v847_v4  ;;  %v1698_v40 = vld [vmem:[#allocation8 + $0x68] sm:$0xf0]  ;;  %v1664_v4 = vld [vmem:[#allocation8 + $0x20] sm:$0xf] }
 0x487   :  { %v1701_v41 = vor.u32 %v1858_v38, %v1698_v40  ;;  %v1650_v40 = vld [vmem:[#allocation8 + $0x8] sm:$0xf0] }
 0x488   :  { %v853_v13 = vmul.f32 %v2411_v7, %v2411_v7 }
 0x489   :  { %1060 = vmatpush.bf16.msra.mxu2 %v1701_v41 }
 0x48b   :  { %v848_v6 = vpop.f32.mrf.mxu3 }
 0x48c   :  { %v849_v55 = vadd.f32 %v848_v6, %v834_v5  ;;  %v1851_v5 = vld [vmem:[#allocation8 + $0x24] sm:$0xf0]  ;;  %v1850_v6 = vld [vmem:[#allocation8 + $0x24] sm:$0xf] }
 0x48d   :  { %1061 = vmatpush.bf16.msra.mxu2 %v1693_v49 }
 0x48e   :  { %v2413_v12 = vsub.f32 %v706_v45, %v849_v55  ;;  %v1689_v45 = vor.u32 %v1857_v43, %v1688_v42  ;;  %v1665_v55 = vor.u32 %v1851_v5, %v1664_v4  ;;  %v1653_v42 = vor.u32 %v1846_v37, %v1650_v40  ;;  %v1869_v43 = vld [vmem:[#allocation10 + $0x38] sm:$0xff] }
 0x48f   :  { %1208 = vmatpush.bf16.msra.mxu3 %v1869_v43  ;;  %v943_v4 = vperm.slane %v2384_v35, 2  ;;  %v1111_v40 = vperm.slane %v2384_v35, 3 }
 0x490   :  { %v854_v14 = vmul.f32 %v2413_v12, %v2413_v12  ;;  %1047 = vmatpush.bf16.msra.mxu1 %v1689_v45  ;;  %v1868_v45 = vld [vmem:[#allocation10 + $0x30] sm:$0xff] }
 0x491   :  { %1062 = vmatpush.bf16.msra.mxu2 %v1685_v50  ;;  %v1866_v50 = vld [vmem:[#allocation10 + $0x20] sm:$0xff] }
 0x492   :  { %v855_v15 = vpack.c.bf16 %v854_v14, %v853_v13  ;;  %v1666_v13 = vld [vmem:[#allocation8 + $0x28] sm:$0xf0] }
 0x493   :  { %v1669_v14 = vor.u32 %v1850_v6, %v1666_v13  ;;  %1209 = vmatpush.bf16.msra.mxu3 %v1868_v45  ;;  %v1865_v6 = vld [vmem:[#allocation10 + $0x18] sm:$0xff]  ;;  %v1872_v13 = vld [vmem:[#allocation10 + $0x50] sm:$0xff] }
 0x494   :  { %912 = vmatmul.bf16.vlgmr.msra.gmra.mxu0 %v855_v15  ;;  %1048 = vmatpush.bf16.msra.mxu1 %v1681_v54  ;;  %v1656_v15 = vld [vmem:[#allocation8 + $0x10] sm:$0xf]  ;;  %v1867_v54 = vld [vmem:[#allocation10 + $0x28] sm:$0xff] }
 0x495   :  { %1063 = vmatpush.bf16.msra.mxu2 %v1677_v3  ;;  %v1657_v18 = vor.u32 %v1849_v16, %v1656_v15  ;;  %v263_v15 = vld [vmem:[%s2472_s10] sm:$0xff] }
 0x496   :  { %v963_v17 = vperm.slane %v263_v15, 0 }
 0x497   :  { %1210 = vmatpush.bf16.msra.mxu3 %v1867_v54 }
 0x498   :  { %1049 = vmatpush.bf16.msra.mxu1 %v1673_v61 }
 0x499   :  { %1064 = vmatpush.bf16.msra.mxu2 %v1669_v14  ;;  %v1870_v14 = vld [vmem:[#allocation10 + $0x40] sm:$0xff] }
 0x49b   :  { %1211 = vmatpush.bf16.msra.mxu3 %v1866_v50 }
 0x49c   :  { %1050 = vmatpush.bf16.msra.mxu1 %v1665_v55  ;;  %v1873_v55 = vld [vmem:[#allocation10 + $0x58] sm:$0xff] }
 0x49d   :  { %1065 = vmatpush.bf16.msra.mxu2 %v1661_v20 }
 0x49f   :  { %1212 = vmatpush.bf16.msra.mxu3 %v1865_v6 }
 0x4a0   :  { %1051 = vmatpush.bf16.msra.mxu1 %v1657_v18 }
 0x4a1   :  { %1066 = vmatpush.bf16.msra.mxu2 %v1653_v42 }
 0x4a4   :  { %1052 = vmatpush.bf16.msra.mxu1 %v1649_v39 }
 0x4a5   :  { %1272 = vmatpush.bf16.msrb.mxu2 %v2333_v56 }
 0x4a8   :  { %1258 = vmatpush.bf16.msrb.mxu1 %v2331_v8  ;;  %v1875_v8 = vld [vmem:[#allocation10 + $0x68] sm:$0xff] }
 0x4a9   :  { %1273 = vmatpush.bf16.msrb.mxu2 %v2339_v10  ;;  %1224 = vmatpush.bf16.msrb.mxu0 %v1875_v8 }
 0x4ac   :  { %1259 = vmatpush.bf16.msrb.mxu1 %v2336_v9 }
 0x4ad   :  { %1274 = vmatpush.bf16.msrb.mxu2 %v2349_v24 }
 0x4b0   :  { %1260 = vmatpush.bf16.msrb.mxu1 %v2342_v11 }
 0x4b1   :  { %1275 = vmatpush.bf16.msrb.mxu2 %v2355_v26  ;;  %v940_v26 = vperm.slane %v2384_v35, 1 }
 0x4b4   :  { %1261 = vmatpush.bf16.msrb.mxu1 %v2346_v23 }
 0x4b5   :  { %1276 = vmatpush.bf16.msrb.mxu2 %v2361_v28 }
 0x4b8   :  { %1262 = vmatpush.bf16.msrb.mxu1 %v2352_v25 }
 0x4b9   :  { %1277 = vmatpush.bf16.msrb.mxu2 %v2367_v30 }
 0x4bc   :  { %1263 = vmatpush.bf16.msrb.mxu1 %v2358_v27 }
 0x4bd   :  { %1278 = vmatpush.bf16.msrb.mxu2 %v2372_v32  ;;  %v1864_v32 = vld [vmem:[#allocation10 + $0x10] sm:$0xff] }
 0x4be   :  { %1213 = vmatpush.bf16.msra.mxu3 %v1864_v32 }
 0x4c0   :  { %1264 = vmatpush.bf16.msrb.mxu1 %v2364_v29  ;;  %v1874_v29 = vld [vmem:[#allocation10 + $0x60] sm:$0xff] }
 0x4c1   :  { %1279 = vmatpush.bf16.msrb.mxu2 %v2376_v33  ;;  %1225 = vmatpush.bf16.msrb.mxu0 %v1874_v29  ;;  %v1871_v33 = vld [vmem:[#allocation10 + $0x48] sm:$0xff] }
 0x4c4   :  { %1265 = vmatpush.bf16.msrb.mxu1 %v2369_v31  ;;  %v1862_v31 = vld [vmem:[#allocation10] sm:$0xff] }
 0x4c5   :  { %1226 = vmatpush.bf16.msrb.mxu0 %v1873_v55 }
 0x4c9   :  { %1227 = vmatpush.bf16.msrb.mxu0 %v1872_v13 }
 0x4cd   :  { %1228 = vmatpush.bf16.msrb.mxu0 %v1871_v33 }
 0x4d1   :  { %1229 = vmatpush.bf16.msrb.mxu0 %v1870_v14 }
 0x511   :  { %v913_v38 = vpop.f32.mrf.mxu0 }
 0x512   :  { %v914_v41 = vadd.f32 1e-05, %v913_v38 }
 0x514   :  { %1920 = vrsqrt.f32 %v914_v41  ;;  %vm924_vm1 = vweird.f32 %v914_v41 }
 0x519   :  { %v915_v49 = vpop.f32.mrf.mxu0 }
 0x51a   :  { %v1921_v51 = vpop.eup %1920  ;;  %v916_v52 = vadd.f32 1e-05, %v915_v49 }
 0x51b   :  { %v919_v53 = vmul.f32 %v1921_v51, %v914_v41  ;;  %vm925_vm0 = vweird.f32 %v1921_v51 }
 0x51c   :  { %1922 = vrsqrt.f32 %v916_v52  ;;  %vm926_vm2 = vmor %vm924_vm1, %vm925_vm0  ;;  %vm934_vm4 = vweird.f32 %v916_v52 }
 0x51d   :  { %v920_v56 = vmul.f32 %v1921_v51, %v919_v53 }
 0x51f   :  { %v921_v57 = vmul.f32 0.5, %v920_v56 }
 0x521   :  { %v922_v9 = vsub.f32 1.5, %v921_v57 }
 0x522   :  { %v1923_v10 = vpop.eup %1922 }
 0x523   :  { %v923_v58 = vmul.f32 %v1921_v51, %v922_v9  ;;  %v929_v59 = vmul.f32 %v1923_v10, %v916_v52  ;;  %vm935_vm3 = vweird.f32 %v1923_v10 }
 0x524   :  { %vm936_vm5 = vmor %vm934_vm4, %vm935_vm3 }
 0x525   :  { %v930_v60 = vmul.f32 %v1923_v10, %v929_v59  ;;  %v927_v11 = vsel %vm926_vm2, %v1921_v51, %v923_v58 }
 0x526   :  { %v938_v23 = vmul.f32 %v927_v11, %v2411_v7 }
 0x527   :  { %v931_v24 = vmul.f32 0.5, %v930_v60 }
 0x528   :  { %v941_v25 = vmul.f32 %v940_v26, %v938_v23 }
 0x529   :  { %v932_v61 = vsub.f32 1.5, %v931_v24 }
 0x52a   :  { %v944_v30 = vadd.f32 %v943_v4, %v941_v25 }
 0x52b   :  { %v933_v2 = vmul.f32 %v1923_v10, %v932_v61 }
 0x52d   :  { %v937_v3 = vsel %vm936_vm5, %v1923_v10, %v933_v2 }
 0x52e   :  { %v939_v28 = vmul.f32 %v937_v3, %v2413_v12  ;;  %v1863_v12 = vld [vmem:[#allocation10 + $0x8] sm:$0xff] }
 0x52f   :  { %1214 = vmatpush.bf16.msra.mxu3 %v1863_v12 }
 0x530   :  { %v942_v27 = vmul.f32 %v940_v26, %v939_v28 }
 0x532   :  { %v945_v7 = vadd.f32 %v943_v4, %v942_v27 }
 0x533   :  { %1215 = vmatpush.bf16.msra.mxu3 %v1862_v31 }
 0x534   :  { %v946_v5 = vpack.c.bf16 %v945_v7, %v944_v30 }
 0x536   :  { %1053 = vmatmul.bf16.vlgmr.msra.gmra.mxu1 %v946_v5  ;;  %1067 = vmatmul.bf16.vlgmr.msra.gmra.mxu2 %v946_v5 }
 0x537   :  { %1291 = vmatpush.bf16.msrb.mxu3 %v2379_v34  ;;  %v264_v34 = vld [vmem:[%s2472_s10 + $0x8] sm:$0xff]  ;;  %s2198_s10 = smov [#allocation17]  }
 0x538   :  { %s1339_s27 = sshll.u32 %s2198_s10, 4  ;;  %s1340_s27 = int_to_ptr.vmem [resolvable:$true] %s1339_s27 }
 0x53b   :  { %1292 = vmatpush.bf16.msrb.mxu3 %v2387_v36 }
 0x53f   :  { %1293 = vmatpush.bf16.msrb.mxu3 %v2393_v47 }
 0x543   :  { %1294 = vmatpush.bf16.msrb.mxu3 %v2396_v62  ;;  %v964_v62 = vperm.slane %v264_v34, 0  ;;  %v1327_v34 = vperm.slane %v2384_v35, 4 }
 0x547   :  { %1295 = vmatpush.bf16.msrb.mxu3 %v2399_v48 }
 0x54b   :  { %1296 = vmatpush.bf16.msrb.mxu3 %v2402_v63 }
 0x54f   :  { %1297 = vmatpush.bf16.msrb.mxu3 %v2405_v0 }
 0x553   :  { %1298 = vmatpush.bf16.msrb.mxu3 %v2408_v1 }
 0x5b3   :  { %v1054_v16 = vpop.f32.mrf.mxu1 }
 0x5b4   :  { %v1055_v47 = vadd.f32 %v1054_v16, %v963_v17 }
 0x5b6   :  { %v1073_v48 = vmax.f32 %v1055_v47, 0.0 }
 0x5b9   :  { %v1068_v36 = vpop.f32.mrf.mxu2 }
 0x5ba   :  { %v1069_v21 = vadd.f32 %v1068_v36, %v964_v62 }
 0x5bb   :  { %v1056_v18 = vpop.f32.mrf.mxu1 }
 0x5bc   :  { %v1057_v19 = vadd.f32 %v1056_v18, %v963_v17  ;;  %v1074_v38 = vmax.f32 %v1069_v21, 0.0 }
 0x5be   :  { %v1075_v20 = vmax.f32 %v1057_v19, 0.0 }
 0x5c0   :  { %v1077_v22 = vpack.c.bf16 %v1075_v20, %v1073_v48 }
 0x5c1   :  { %v1070_v37 = vpop.f32.mrf.mxu2 }
 0x5c2   :  { %v1071_v63 = vadd.f32 %v1070_v37, %v964_v62  ;;  %1216 = vmatmul.bf16.vlgmr.msra.gmra.mxu3 %v1077_v22  ;;  %v1330_v62 = vperm.slane %v2384_v35, 5 }
 0x5c4   :  { %v1076_v0 = vmax.f32 %v1071_v63, 0.0 }
 0x5c6   :  { %v1078_v39 = vpack.c.bf16 %v1076_v0, %v1074_v38 }
 0x5c8   :  { %1230 = vmatmul.bf16.vlgmr.msrb.gmra.mxu0 %v1078_v39 }
 0x645   :  { %v1217_v41 = vpop.f32.mrf.mxu3  ;;  %v1231_v42 = vpop.f32.mrf.mxu0 }
 0x646   :  { %v1218_v43 = vadd.f32 %v1217_v41, %v1111_v40 }
 0x648   :  { %v1232_v44 = vadd.f32 %v1231_v42, %v1218_v43 }
 0x64a   :  { %v1236_v45 = vadd.f32 %v1232_v44, %v944_v30 }
 0x64c   :  { %v1238_v46 = vpack.c.bf16 %v1236_v45, %v1236_v45 }
 0x64d   :  { %v1219_v1 = vpop.f32.mrf.mxu3  ;;  %v1233_v51 = vpop.f32.mrf.mxu0 }
 0x64e   :  { %v1220_v49 = vadd.f32 %v1219_v1, %v1111_v40  ;;  %v1240_v52 = vunpack.c.l.bf16 %v1238_v46  ;;  %v1248_v57 = vunpack.c.l.b16 %v1238_v46 }
 0x650   :  { %v1234_v53 = vadd.f32 %v1233_v51, %v1220_v49  ;;  %v1242_v8 = vsub.f32 %v1236_v45, %v1240_v52 }
 0x652   :  { %v1237_v54 = vadd.f32 %v1234_v53, %v945_v7  ;;  %v1244_v10 = vpack.c.bf16 %v1242_v8, %v1242_v8 }
 0x654   :  { %v1239_v56 = vpack.c.bf16 %v1237_v54, %v1237_v54  ;;  %v1254_v11 = vunpack.c.l.b16 %v1244_v10 }
 0x656   :  { %v1241_v50 = vunpack.c.l.bf16 %v1239_v56  ;;  %v1249_v9 = vunpack.c.l.b16 %v1239_v56 }
 0x658   :  { %v1243_v58 = vsub.f32 %v1237_v54, %v1241_v50  ;;  %v1250_v59 = vpack.c.b16 %v1249_v9, %v1248_v57 }
 0x65a   :  { %v1245_v60 = vpack.c.bf16 %v1243_v58, %v1243_v58  ;;  %1266 = vmatmul.bf16.vlgmr.msrb.gmra.mxu1 %v1250_v59 }
 0x65c   :  { %v1255_v24 = vunpack.c.l.b16 %v1245_v60 }
 0x65e   :  { %v1256_v61 = vpack.c.b16 %v1255_v24, %v1254_v11 }
 0x660   :  { %1280 = vmatmul.bf16.vlgmr.msrb.gmra.mxu2 %v1256_v61 }
 0x6d7   :  { %v1267_v23 = vpop.f32.mrf.mxu1 }
 0x6df   :  { %v1269_v3 = vpop.f32.mrf.mxu1 }
 0x6e3   :  { %v1281_v26 = vpop.f32.mrf.mxu2 }
 0x6e4   :  { %v1282_v2 = vadd.f32 %v1281_v26, %v1267_v23 }
 0x6e6   :  { %v1286_v28 = vsub.f32 %v1236_v45, %v1282_v2 }
 0x6e8   :  { %v1288_v30 = vmul.f32 %v1286_v28, %v1286_v28 }
 0x6eb   :  { %v1283_v25 = vpop.f32.mrf.mxu2 }
 0x6ec   :  { %v1284_v4 = vadd.f32 %v1283_v25, %v1269_v3 }
 0x6ee   :  { %v1287_v27 = vsub.f32 %v1237_v54, %v1284_v4 }
 0x6f0   :  { %v1289_v7 = vmul.f32 %v1287_v27, %v1287_v27 }
 0x6f2   :  { %v1290_v5 = vpack.c.bf16 %v1289_v7, %v1288_v30 }
 0x6f4   :  { %1299 = vmatmul.bf16.vlgmr.msrb.gmra.mxu3 %v1290_v5 }
 0x777   :  { %v1300_v6 = vpop.f32.mrf.mxu3 }
 0x778   :  { %v1301_v29 = vadd.f32 1e-05, %v1300_v6 }
 0x77a   :  { %1924 = vrsqrt.f32 %v1301_v29  ;;  %vm1311_vm7 = vweird.f32 %v1301_v29 }
 0x77f   :  { %v1302_v32 = vpop.f32.mrf.mxu3 }
 0x780   :  { %v1925_v55 = vpop.eup %1924  ;;  %v1303_v12 = vadd.f32 1e-05, %v1302_v32 }
 0x781   :  { %v1306_v13 = vmul.f32 %v1925_v55, %v1301_v29  ;;  %vm1312_vm6 = vweird.f32 %v1925_v55 }
 0x782   :  { %1926 = vrsqrt.f32 %v1303_v12  ;;  %vm1313_vm8 = vmor %vm1311_vm7, %vm1312_vm6  ;;  %vm1321_vm10 = vweird.f32 %v1303_v12 }
 0x783   :  { %v1307_v31 = vmul.f32 %v1925_v55, %v1306_v13 }
 0x785   :  { %v1308_v33 = vmul.f32 0.5, %v1307_v31 }
 0x787   :  { %v1309_v14 = vsub.f32 1.5, %v1308_v33 }
 0x788   :  { %v1927_v15 = vpop.eup %1926 }
 0x789   :  { %v1310_v16 = vmul.f32 %v1925_v55, %v1309_v14  ;;  %v1316_v17 = vmul.f32 %v1927_v15, %v1303_v12  ;;  %vm1322_vm9 = vweird.f32 %v1927_v15 }
 0x78a   :  { %vm1323_vm11 = vmor %vm1321_vm10, %vm1322_vm9 }
 0x78b   :  { %v1314_v36 = vsel %vm1313_vm8, %v1925_v55, %v1310_v16  ;;  %v1317_v47 = vmul.f32 %v1927_v15, %v1316_v17 }
 0x78c   :  { %v1325_v18 = vmul.f32 %v1314_v36, %v1286_v28 }
 0x78d   :  { %v1318_v19 = vmul.f32 0.5, %v1317_v47 }
 0x78e   :  { %v1328_v48 = vmul.f32 %v1327_v34, %v1325_v18 }
 0x78f   :  { %v1319_v20 = vsub.f32 1.5, %v1318_v19 }
 0x790   :  { %v1331_v21 = vadd.f32 %v1330_v62, %v1328_v48 }
 0x791   :  { %v1320_v22 = vmul.f32 %v1927_v15, %v1319_v20 }
 0x792   :  { %1333 = vst [vmem:[#allocation17] sm:$0xff] %v1331_v21 }
 0x793   :  { %v1324_v37 = vsel %vm1323_vm11, %v1927_v15, %v1320_v22 }
 0x794   :  { %v1326_v63 = vmul.f32 %v1324_v37, %v1287_v27 }
 0x796   :  { %v1329_v38 = vmul.f32 %v1327_v34, %v1326_v63 }
 0x798   :  { %v1332_v0 = vadd.f32 %v1330_v62, %v1329_v38 }
 0x79a   :  { %1334 = vst [vmem:[#allocation17 + $0x8] sm:$0xff] %v1332_v0 }
 0x79b   :  { %1347 = dma.vmem_to_hbm [thread:$0]  %s1340_s27, 256, %s1342_s1, [#allocation4], %s2184_s29, %s2184_s29, %s2185_s30  }
 0x79c   :  { %2178 = dma.done.wait [#allocation4], 256  }
 0x79d   :  { %2179 = vsyncadd [#allocation4], 4294967040 }
 0x79e   :  { %1352 = vsyncpa [#allocation3], 1 }
 0x79f   :  { %1353 = vsyncpa [#allocation6], 1 }
 0x7a0   :  { %1354 = vsyncpa [#allocation9], 1 }
 0x7a1   :  { %1355 = vsyncpa [#allocation12], 1 }
 0x7a2   :  { %1356 = vsyncpa [#allocation15], 1 }
 0x7a3   :  { %1357 = vsyncpa [#allocation4], 1 }

</bundles_post_ra>
